<compile_context>
chip_gen: v5e
topology: v5e:2x2
jax: 0.10.0
libtpu: 0.0.40
codegen_flags: <defaults>
</compile_context>

<pallas_src>
import functools

import jax
import jax.numpy as jnp
from jax.experimental import pallas as pl
from jax.experimental.pallas import tpu as pltpu


LANE = 128          # feature-dim alignment for hidden/output (lane width)
SUBLANE = 8         # batch-dim alignment (f32 sublane)
BF16_PACK = 16      # bf16 sublane packing for the w1 contraction rows
DEFAULT_TILE_B = 512


def _round_up(n, m):
    return ((n + m - 1) // m) * m


def _cdiv(a, b):
    return -(-a // b)


def mlp_kernel(x_ref,
               w1_ref, t1_ref,
               w2_ref, t2_ref,
               w3_ref, b3_ref,
               o_ref):
    # x tile: (TILE_B, K1r) bf16 (cast fused into the wrapper copy).
    x = x_ref[...]

    # fc1 + bn1 (scale folded into w1, bias/mean folded into t1) + relu.
    # Epilogue stays f32 (v5e has no bf16 VALU); only MXU operands are bf16.
    h1 = jnp.dot(x, w1_ref[...], preferred_element_type=jnp.float32)
    h1 = jnp.maximum(h1 + t1_ref[...], 0.0)

    # dropout: identity in eval mode
    # TODO(synk): training-mode dropout (pltpu.prng_random_bits mask) not emitted.

    # fc2 + bn2 (scale folded into w2, bias/mean folded into t2) + relu
    h2 = jnp.dot(h1.astype(jnp.bfloat16), w2_ref[...],
                 preferred_element_type=jnp.float32)
    h2 = jnp.maximum(h2 + t2_ref[...], 0.0)

    # fc3 (+ bias); lane-dense padded bf16 output, wrapper slices real out_dim.
    y = jnp.dot(h2.astype(jnp.bfloat16), w3_ref[...],
                preferred_element_type=jnp.float32)
    o_ref[...] = (y + b3_ref[...]).astype(o_ref.dtype)


def _choose_tile(B, tile_b):
    """Pick a batch tile: minimal padding waste, >=2 grid steps when possible
    (so the 'parallel' batch axis actually shards across both v7x TCs)."""
    Bp8 = _round_up(B, SUBLANE)
    if Bp8 <= tile_b:
        if Bp8 >= 2 * SUBLANE:
            tb = _round_up(_cdiv(Bp8, 2), SUBLANE)   # split into 2 tiles
        else:
            tb = Bp8
    else:
        tb = tile_b
    Bp = _round_up(Bp8, tb)
    return tb, Bp


@functools.partial(jax.jit, static_argnames=("out_dim", "in_dim", "tile_b"))
def final_best_model_forward(x, params, *, out_dim, in_dim, tile_b=DEFAULT_TILE_B):
    """x: (B, in_dim) float32. params: dict of padded/folded kernel parameters."""
    B = x.shape[0]

    K1r = params["w1"].shape[0]  # in_dim rounded to 16 (bf16 packing), NOT 128
    H1 = params["w1"].shape[1]   # hidden1 padded to 128
    H2 = params["w2"].shape[1]   # hidden2 padded to 128
    NP = params["w3"].shape[1]   # output padded to 128 (lane-dense stores)

    tb, Bp = _choose_tile(B, tile_b)
    grid = (Bp // tb,)

    # Fuse the f32->bf16 cast into the (batch-only) pad copy; skip the pad
    # entirely when no padding is needed.
    if B == Bp and in_dim == K1r:
        xp = x.astype(jnp.bfloat16)
    else:
        xp = (jnp.zeros((Bp, K1r), jnp.bfloat16)
              .at[:B, :in_dim].set(x.astype(jnp.bfloat16)))

    resident = lambda a: pl.BlockSpec(a.shape, lambda i: (0, 0))

    in_arrays = (
        xp,
        params["w1"], params["t1"],
        params["w2"], params["t2"],
        params["w3"], params["b3"],
    )
    in_specs = [pl.BlockSpec((tb, K1r), lambda i: (i, 0))]      # x: tiled over batch
    in_specs += [resident(a) for a in in_arrays[1:]]            # weights: VMEM-resident

    flops = 2 * Bp * (K1r * H1 + H1 * H2 + H2 * NP)
    bytes_accessed = (
        xp.size * 2 + Bp * NP * 2                               # bf16 x in, bf16 out
        + sum(int(params[k].size) * 2 for k in ("w1", "w2", "w3"))  # bf16 weights
        + sum(int(params[k].size) * 4 for k in ("t1", "t2", "b3"))  # f32 shifts
    )

    out = pl.pallas_call(
        mlp_kernel,
        out_shape=jax.ShapeDtypeStruct((Bp, NP), jnp.bfloat16),
        grid=grid,
        in_specs=in_specs,
        out_specs=pl.BlockSpec((tb, NP), lambda i: (i, 0)),
        compiler_params=pltpu.CompilerParams(
            dimension_semantics=("parallel",),   # v7x: shard batch over 2 TCs
            vmem_limit_bytes=32 * 1024 * 1024,   # <= scoped limit on v5e/v6e/v7x
        ),
        cost_estimate=pl.CostEstimate(
            flops=flops, transcendentals=0, bytes_accessed=bytes_accessed),
    )(*in_arrays)

    return out[:B, :out_dim]


def make_params(input_dim, output_dim, hidden_dim1, hidden_dim2, eps=1e-5):
    """Deterministic synthetic parameters matching the PyTorch module shapes.

    Returns (kernel_params, ref_params):
      kernel_params: BN scale folded into bf16 weights (fold done in f32),
                     linear bias / running mean folded into f32 shifts,
                     hidden/output dims padded to 128, w1 rows to 16.
      ref_params:    unfolded f32 parameters for the plain-JAX reference.
    """
    key = jax.random.PRNGKey(42)
    ks = jax.random.split(key, 12)

    def lin(kw, kb, fan_in, fan_out):
        bound = 1.0 / jnp.sqrt(fan_in)
        w = jax.random.uniform(kw, (fan_out, fan_in), jnp.float32, -bound, bound)
        b = jax.random.uniform(kb, (fan_out,), jnp.float32, -bound, bound)
        return w, b

    w1, b1 = lin(ks[0], ks[1], input_dim, hidden_dim1)
    w2, b2 = lin(ks[2], ks[3], hidden_dim1, hidden_dim2)
    w3, b3 = lin(ks[4], ks[5], hidden_dim2, output_dim)

    # BatchNorm1d params (gamma=1, beta=0 default init) + synthetic running stats.
    g1 = jnp.ones((hidden_dim1,), jnp.float32)
    be1 = jnp.zeros((hidden_dim1,), jnp.float32)
    rm1 = 0.1 * jax.random.normal(ks[6], (hidden_dim1,), jnp.float32)
    rv1 = 1.0 + 0.1 * jax.random.uniform(ks[7], (hidden_dim1,), jnp.float32)

    g2 = jnp.ones((hidden_dim2,), jnp.float32)
    be2 = jnp.zeros((hidden_dim2,), jnp.float32)
    rm2 = 0.1 * jax.random.normal(ks[8], (hidden_dim2,), jnp.float32)
    rv2 = 1.0 + 0.1 * jax.random.uniform(ks[9], (hidden_dim2,), jnp.float32)

    # Fold BN (eval mode): relu(bn(fc(x))) = relu(x @ (W^T * s) + t),
    # s = g / sqrt(rv + eps), t = beta + (b - rm) * s.   (All folds in f32.)
    s1 = g1 / jnp.sqrt(rv1 + eps)
    t1 = be1 + (b1 - rm1) * s1
    s2 = g2 / jnp.sqrt(rv2 + eps)
    t2 = be2 + (b2 - rm2) * s2

    w1f = w1.T * s1[None, :]     # (in, h1), scale folded per output column
    w2f = w2.T * s2[None, :]     # (h1, h2)
    w3f = w3.T                   # (h2, out)

    # Padded sizes: hidden/output to 128 lanes; w1 contraction rows only to 16.
    K1r = _round_up(input_dim, BF16_PACK)
    H1 = _round_up(hidden_dim1, LANE)
    H2 = _round_up(hidden_dim2, LANE)
    NO = _round_up(output_dim, LANE)

    def pad_w(w_t, rows, cols):  # w_t is (in, out) f32; pad in f32, then bf16
        out = jnp.zeros((rows, cols), jnp.float32)
        return out.at[:w_t.shape[0], :w_t.shape[1]].set(w_t).astype(jnp.bfloat16)

    def pad_row(v, cols):
        out = jnp.zeros((1, cols), jnp.float32)
        return out.at[0, :v.shape[0]].set(v)

    kernel_params = {
        "w1": pad_w(w1f, K1r, H1), "t1": pad_row(t1, H1),
        "w2": pad_w(w2f, H1, H2), "t2": pad_row(t2, H2),
        "w3": pad_w(w3f, H2, NO), "b3": pad_row(b3, NO),
    }
    ref_params = {
        "w1": w1, "b1": b1, "g1": g1, "be1": be1, "rm1": rm1, "rv1": rv1,
        "w2": w2, "b2": b2, "g2": g2, "be2": be2, "rm2": rm2, "rv2": rv2,
        "w3": w3, "b3": b3, "eps": eps,
    }
    return kernel_params, ref_params


def reference_forward(x, p):
    """Plain-JAX replica of the PyTorch module in eval mode."""
    def bn(h, g, be, rm, rv):
        return (h - rm) / jnp.sqrt(rv + p["eps"]) * g + be
    h1 = jnp.maximum(bn(x @ p["w1"].T + p["b1"],
                        p["g1"], p["be1"], p["rm1"], p["rv1"]), 0.0)
    h2 = jnp.maximum(bn(h1 @ p["w2"].T + p["b2"],
                        p["g2"], p["be2"], p["rm2"], p["rv2"]), 0.0)
    return h2 @ p["w3"].T + p["b3"]


if __name__ == "__main__":
    # Small shapes consistent with the module; batch chosen so the tile picker
    # produces a 2-step grid (both TCs on v7x).
    batch = 512
    input_dim, hidden_dim1, hidden_dim2, output_dim = 32, 64, 32, 4

    kernel_params, ref_params = make_params(input_dim, output_dim,
                                            hidden_dim1, hidden_dim2)

    x = jax.random.normal(jax.random.PRNGKey(0), (batch, input_dim), jnp.float32)

    out = final_best_model_forward(x, kernel_params,
                                   out_dim=output_dim, in_dim=input_dim,
                                   tile_b=DEFAULT_TILE_B)
    out = jax.block_until_ready(out)

    ref = reference_forward(x, ref_params)
    assert out.shape == (batch, output_dim)
    # bf16 weights/activations on the MXU (f32 accumulate) + bf16 output
    # -> loosened tolerance vs the f32 reference.
    assert jnp.allclose(out.astype(jnp.float32), ref, atol=5e-2, rtol=5e-2), \
        "mismatch vs JAX reference"

    print("KERNEL_OK")
</pallas_src>

<mosaic_0001>
module attributes {stable_mosaic.version = 11 : i64} {
  func.func @mlp_kernel(%arg0: i32, %arg1: memref<256x32xbf16, #tpu.memory_space<vmem>>, %arg2: memref<32x128xbf16, #tpu.memory_space<vmem>>, %arg3: memref<1x128xf32, #tpu.memory_space<vmem>>, %arg4: memref<128x128xbf16, #tpu.memory_space<vmem>>, %arg5: memref<1x128xf32, #tpu.memory_space<vmem>>, %arg6: memref<128x128xbf16, #tpu.memory_space<vmem>>, %arg7: memref<1x128xf32, #tpu.memory_space<vmem>>, %arg8: memref<256x128xbf16, #tpu.memory_space<vmem>>) attributes {dimension_semantics = [#tpu.dimension_semantics<parallel>], iteration_bounds = array<i64: 2>, scalar_prefetch = 0 : i64, scratch_operands = 0 : i64, tpu.core_type = #tpu.core_type<tc>, window_params = [{transform_indices = @transform_0, window_bounds = array<i64: 256, 32>}, {pipeline_mode = #tpu.pipeline_mode<synchronous>, transform_indices = @transform_1, window_bounds = array<i64: 32, 128>}, {pipeline_mode = #tpu.pipeline_mode<synchronous>, transform_indices = @transform_2, window_bounds = array<i64: 1, 128>}, {pipeline_mode = #tpu.pipeline_mode<synchronous>, transform_indices = @transform_3, window_bounds = array<i64: 128, 128>}, {pipeline_mode = #tpu.pipeline_mode<synchronous>, transform_indices = @transform_4, window_bounds = array<i64: 1, 128>}, {pipeline_mode = #tpu.pipeline_mode<synchronous>, transform_indices = @transform_5, window_bounds = array<i64: 128, 128>}, {pipeline_mode = #tpu.pipeline_mode<synchronous>, transform_indices = @transform_6, window_bounds = array<i64: 1, 128>}, {transform_indices = @transform_7, window_bounds = array<i64: 256, 128>}]} {
    %c0 = arith.constant 0 : index
    %c0_0 = arith.constant 0 : index
    %0 = vector.load %arg1[%c0, %c0_0] : memref<256x32xbf16, #tpu.memory_space<vmem>>, vector<256x32xbf16>
    %c0_1 = arith.constant 0 : index
    %c0_2 = arith.constant 0 : index
    %1 = vector.load %arg2[%c0_1, %c0_2] : memref<32x128xbf16, #tpu.memory_space<vmem>>, vector<32x128xbf16>
    %cst = arith.constant dense<0.000000e+00> : vector<256x128xf32>
    %2 = tpu.matmul %0, %1, %cst {dimension_numbers = #tpu.dot_dimension_numbers<[1], [0], [0], [1], [0, 0, 1, 1], [], []>} : vector<256x32xbf16>, vector<32x128xbf16>, vector<256x128xf32> -> vector<256x128xf32>
    %c0_3 = arith.constant 0 : index
    %c0_4 = arith.constant 0 : index
    %3 = vector.load %arg3[%c0_3, %c0_4] : memref<1x128xf32, #tpu.memory_space<vmem>>, vector<1x128xf32>
    %4 = vector.broadcast %3 : vector<1x128xf32> to vector<256x128xf32>
    %5 = arith.addf %2, %4 : vector<256x128xf32>
    %cst_5 = arith.constant 0.000000e+00 : f32
    %6 = vector.broadcast %cst_5 : f32 to vector<256x128xf32>
    %7 = arith.maximumf %5, %6 : vector<256x128xf32>
    %8 = arith.truncf %7 : vector<256x128xf32> to vector<256x128xbf16>
    %c0_6 = arith.constant 0 : index
    %c0_7 = arith.constant 0 : index
    %9 = vector.load %arg4[%c0_6, %c0_7] : memref<128x128xbf16, #tpu.memory_space<vmem>>, vector<128x128xbf16>
    %cst_8 = arith.constant dense<0.000000e+00> : vector<256x128xf32>
    %10 = tpu.matmul %8, %9, %cst_8 {dimension_numbers = #tpu.dot_dimension_numbers<[1], [0], [0], [1], [0, 0, 1, 1], [], []>} : vector<256x128xbf16>, vector<128x128xbf16>, vector<256x128xf32> -> vector<256x128xf32>
    %c0_9 = arith.constant 0 : index
    %c0_10 = arith.constant 0 : index
    %11 = vector.load %arg5[%c0_9, %c0_10] : memref<1x128xf32, #tpu.memory_space<vmem>>, vector<1x128xf32>
    %12 = vector.broadcast %11 : vector<1x128xf32> to vector<256x128xf32>
    %13 = arith.addf %10, %12 : vector<256x128xf32>
    %cst_11 = arith.constant 0.000000e+00 : f32
    %14 = vector.broadcast %cst_11 : f32 to vector<256x128xf32>
    %15 = arith.maximumf %13, %14 : vector<256x128xf32>
    %16 = arith.truncf %15 : vector<256x128xf32> to vector<256x128xbf16>
    %c0_12 = arith.constant 0 : index
    %c0_13 = arith.constant 0 : index
    %17 = vector.load %arg6[%c0_12, %c0_13] : memref<128x128xbf16, #tpu.memory_space<vmem>>, vector<128x128xbf16>
    %cst_14 = arith.constant dense<0.000000e+00> : vector<256x128xf32>
    %18 = tpu.matmul %16, %17, %cst_14 {dimension_numbers = #tpu.dot_dimension_numbers<[1], [0], [0], [1], [0, 0, 1, 1], [], []>} : vector<256x128xbf16>, vector<128x128xbf16>, vector<256x128xf32> -> vector<256x128xf32>
    %c0_15 = arith.constant 0 : index
    %c0_16 = arith.constant 0 : index
    %19 = vector.load %arg7[%c0_15, %c0_16] : memref<1x128xf32, #tpu.memory_space<vmem>>, vector<1x128xf32>
    %20 = vector.broadcast %19 : vector<1x128xf32> to vector<256x128xf32>
    %21 = arith.addf %18, %20 : vector<256x128xf32>
    %22 = arith.truncf %21 : vector<256x128xf32> to vector<256x128xbf16>
    %c0_17 = arith.constant 0 : index
    %c0_18 = arith.constant 0 : index
    %23 = vector.load %arg8[%c0_17, %c0_18] : memref<256x128xbf16, #tpu.memory_space<vmem>>, vector<256x128xbf16>
    tpu.vector_store %arg8[%c0_17, %c0_18], %22 {strides = array<i32>} : memref<256x128xbf16, #tpu.memory_space<vmem>>, vector<256x128xbf16>,
    return
  }
  func.func @transform_0(%arg0: i32) -> (i32, i32) {
    %c0_i32 = arith.constant 0 : i32
    %c0_i32_0 = arith.constant 0 : i32
    return %arg0, %c0_i32 : i32, i32
  }
  func.func @transform_1(%arg0: i32) -> (i32, i32) {
    %c0_i32 = arith.constant 0 : i32
    %c0_i32_0 = arith.constant 0 : i32
    %c0_i32_1 = arith.constant 0 : i32
    return %c0_i32, %c0_i32_0 : i32, i32
  }
  func.func @transform_2(%arg0: i32) -> (i32, i32) {
    %c0_i32 = arith.constant 0 : i32
    %c0_i32_0 = arith.constant 0 : i32
    %c0_i32_1 = arith.constant 0 : i32
    return %c0_i32, %c0_i32_0 : i32, i32
  }
  func.func @transform_3(%arg0: i32) -> (i32, i32) {
    %c0_i32 = arith.constant 0 : i32
    %c0_i32_0 = arith.constant 0 : i32
    %c0_i32_1 = arith.constant 0 : i32
    return %c0_i32, %c0_i32_0 : i32, i32
  }
  func.func @transform_4(%arg0: i32) -> (i32, i32) {
    %c0_i32 = arith.constant 0 : i32
    %c0_i32_0 = arith.constant 0 : i32
    %c0_i32_1 = arith.constant 0 : i32
    return %c0_i32, %c0_i32_0 : i32, i32
  }
  func.func @transform_5(%arg0: i32) -> (i32, i32) {
    %c0_i32 = arith.constant 0 : i32
    %c0_i32_0 = arith.constant 0 : i32
    %c0_i32_1 = arith.constant 0 : i32
    return %c0_i32, %c0_i32_0 : i32, i32
  }
  func.func @transform_6(%arg0: i32) -> (i32, i32) {
    %c0_i32 = arith.constant 0 : i32
    %c0_i32_0 = arith.constant 0 : i32
    %c0_i32_1 = arith.constant 0 : i32
    return %c0_i32, %c0_i32_0 : i32, i32
  }
  func.func @transform_7(%arg0: i32) -> (i32, i32) {
    %c0_i32 = arith.constant 0 : i32
    %c0_i32_0 = arith.constant 0 : i32
    return %arg0, %c0_i32 : i32, i32
  }
}

</mosaic_0001>

<bundles_post_ra>
// kernel: final_best_model_forward.1
= control target key start
LH: loop header
LB: loop body
LE: loop exit
PB: predicated region body
PF: predicated region fallthrough
CT: control target
= control target key end

     0   :  { %s1452_s24 = smov 0   ;;  %s1693_s0 = inlined_call_operand.vmem [shape: bf16[512,32], index: 0, kind: input, shape index: {}]   ;;  %s1694_s1 = inlined_call_operand.vmem [shape: bf16[32,128], index: 1, kind: input, shape index: {}]   ;;  %s1695_s2 = inlined_call_operand.vmem [shape: f32[1,128], index: 2, kind: input, shape index: {}]   ;;  %s1696_s3 = inlined_call_operand.vmem [shape: bf16[128,128], index: 3, kind: input, shape index: {}]   ;;  %s1697_s4 = inlined_call_operand.vmem [shape: f32[1,128], index: 4, kind: input, shape index: {}]   ;;  %s1698_s5 = inlined_call_operand.vmem [shape: bf16[128,128], index: 5, kind: input, shape index: {}]   ;;  %s1699_s6 = inlined_call_operand.vmem [shape: f32[1,128], index: 6, kind: input, shape index: {}]   ;;  %s1700_s7 = inlined_call_operand.vmem [shape: bf16[512,128], index: 7, kind: output, shape index: {}]  }
   0x1 LB: > { %s1083_s25 = sadd.s32 4294967295, %s1410_s24   ;;  %p1087_p0 = scmp.ge.s32.totalorder %s1410_s24, 1  ;;  %s1410_s24 = sphi %s1452_s24, %s17_s24  }
   0x2   : > { %p238_p1 = scmp.lt.s32.totalorder %s1410_s24, 3 }
   0x4   : > { %p239_p2 = pnand %p1087_p0, %p238_p1 }
   0x5   : > { %s1088_s28 = sshll.u32 (!%p239_p2), %s1083_s25, 5 }
   0x6   : > { %242 = sbr.rel (%p239_p2) target bundleno = 690 (0x2b2), region = 48  ;;  %p271_p3 = scmp.lt.s32.totalorder (!%p239_p2), %s1088_s28, 63 }
   0xb   : > { %v1263_v0 = vld [vmem:[%s1694_s1 + $0x8] sm:$0xff]  ;;  %v1262_v1 = vld [vmem:[%s1694_s1] sm:$0xff]  ;;  %s1702_s28 = smov (!%p271_p3, %s1088_s28), 63  ;;  %vm415_vm0 = vcmask 261120   ;;  %v1271_v7 = vld [vmem:[%s1696_s3 + $0x38] sm:$0xff] }
   0xc   : > { %470 = vmatpush.bf16.msra.mxu0 %v1263_v0  ;;  %1375 = vmatpush.bf16.msra.mxu3 %v1263_v0  ;;  %s1089_s8 = sshll.u32 %s1702_s28, 2  ;;  %v1270_v9 = vld [vmem:[%s1696_s3 + $0x30] sm:$0xff]  ;;  %v1269_v10 = vld [vmem:[%s1696_s3 + $0x28] sm:$0xff]  ;;  %v1268_v11 = vld [vmem:[%s1696_s3 + $0x20] sm:$0xff] }
   0xd   : > { %s1474_s11 = scalar_lea.vmem %s1693_s0, %s1089_s8  ;;  %669 = vmatpush.bf16.msra.mxu1 %v1271_v7  ;;  %v1267_v12 = vld [vmem:[%s1696_s3 + $0x18] sm:$0xff]  ;;  %v1266_v14 = vld [vmem:[%s1696_s3 + $0x10] sm:$0xff]  ;;  %v1265_v15 = vld [vmem:[%s1696_s3 + $0x8] sm:$0xff] }
   0xe   : > { %v1246_v2 = vld [vmem:[%s1474_s11] sm:$0xff]  ;;  %v1247_v3 = vld [vmem:[%s1474_s11 + $0x8] sm:$0xff]  ;;  %v1248_v4 = vld [vmem:[%s1474_s11 + $0x10] sm:$0xff] }
   0xf   : > { %v1249_v5 = vld [vmem:[%s1474_s11 + $0x18] sm:$0xff]  ;;  %v1250_v6 = vld [vmem:[%s1474_s11 + $0x20] sm:$0xff]  ;;  %v1251_v8 = vld [vmem:[%s1474_s11 + $0x28] sm:$0xff] }
  0x10   : > { %471 = vmatpush.bf16.msra.mxu0 %v1262_v1  ;;  %1376 = vmatpush.bf16.msra.mxu3 %v1262_v1  ;;  %v1252_v13 = vld [vmem:[%s1474_s11 + $0x30] sm:$0xff]  ;;  %v1264_v16 = vld [vmem:[%s1696_s3] sm:$0xff]  ;;  %v1253_v17 = vld [vmem:[%s1474_s11 + $0x38] sm:$0xff] }
  0x11   : > { %670 = vmatpush.bf16.msra.mxu1 %v1270_v9  ;;  %v1254_v18 = vld [vmem:[%s1474_s11 + $0x40] sm:$0xff]  ;;  %v1255_v27 = vld [vmem:[%s1474_s11 + $0x48] sm:$0xff]  ;;  %v1256_v35 = vld [vmem:[%s1474_s11 + $0x50] sm:$0xff] }
  0x12   : > { %v1520_v20 = vld [vmem:[%s1695_s2] ss:$0 sm:$0xff]  ;;  %v1259_v37 = vld [vmem:[%s1474_s11 + $0x68] sm:$0xff]  ;;  %v1257_v44 = vld [vmem:[%s1474_s11 + $0x58] sm:$0xff] }
  0x13   : > { %1164 = vmatmul.msk.bf16.vlgmr.msra.gmra.mxu0 %vm415_vm0, %v1246_v2  ;;  %1177 = vmatmul.msk.bf16.vlgmr.msra.gmra.mxu3 %vm415_vm0, %v1259_v37  ;;  %v1260_v46 = vld [vmem:[%s1474_s11 + $0x70] sm:$0xff]  ;;  %v1258_v53 = vld [vmem:[%s1474_s11 + $0x60] sm:$0xff]  ;;  %v1261_v55 = vld [vmem:[%s1474_s11 + $0x78] sm:$0xff]  ;;  %s1630_s11 = scalar_lea.vmem %s1700_s7, %s1089_s8 }
  0x14   : > { %1377 = vmatpush.bf16.msrb.mxu3 %v1271_v7  ;;  %v1279_v2 = vld [vmem:[%s1698_s5 + $0x38] sm:$0xff] }
  0x15   : > { %671 = vmatpush.bf16.msra.mxu1 %v1269_v10  ;;  %874 = vmatpush.bf16.msra.mxu2 %v1279_v2 }
  0x18   : > { %1378 = vmatpush.bf16.msrb.mxu3 %v1270_v9  ;;  %v1276_v9 = vld [vmem:[%s1698_s5 + $0x20] sm:$0xff] }
  0x19   : > { %672 = vmatpush.bf16.msra.mxu1 %v1268_v11 }
  0x1c   : > { %1379 = vmatpush.bf16.msrb.mxu3 %v1269_v10 }
  0x1d   : > { %673 = vmatpush.bf16.msra.mxu1 %v1267_v12 }
  0x20   : > { %1380 = vmatpush.bf16.msrb.mxu3 %v1268_v11 }
  0x21   : > { %674 = vmatpush.bf16.msra.mxu1 %v1266_v14 }
  0x23   : > { %1165 = vmatmul.msk.bf16.gmra.mxu0 %vm415_vm0, %v1247_v3  ;;  %1178 = vmatmul.msk.bf16.gmra.mxu3 %vm415_vm0, %v1260_v46 }
  0x24   : > { %1381 = vmatpush.bf16.msrb.mxu3 %v1267_v12 }
  0x25   : > { %675 = vmatpush.bf16.msra.mxu1 %v1265_v15 }
  0x28   : > { %1382 = vmatpush.bf16.msrb.mxu3 %v1266_v14 }
  0x29   : > { %676 = vmatpush.bf16.msra.mxu1 %v1264_v16 }
  0x2c   : > { %1383 = vmatpush.bf16.msrb.mxu3 %v1265_v15 }
  0x30   : > { %1384 = vmatpush.bf16.msrb.mxu3 %v1264_v16 }
  0x33   : > { %1166 = vmatmul.msk.bf16.gmra.mxu0 %vm415_vm0, %v1248_v4  ;;  %1179 = vmatmul.msk.bf16.gmra.mxu3 %vm415_vm0, %v1261_v55 }
  0x34   : > { %1385 = vmatpush.bf16.msra.mxu3 %v1279_v2 }
  0x43   : > { %1167 = vmatmul.msk.bf16.gmra.mxu0 %vm415_vm0, %v1249_v5 }
  0x53   : > { %1168 = vmatmul.msk.bf16.gmra.mxu0 %vm415_vm0, %v1250_v6  ;;  %v1278_v6 = vld [vmem:[%s1698_s5 + $0x30] sm:$0xff] }
  0x54   : > { %875 = vmatpush.bf16.msra.mxu2 %v1278_v6  ;;  %1386 = vmatpush.bf16.msra.mxu3 %v1278_v6 }
  0x63   : > { %1169 = vmatmul.msk.bf16.gmra.mxu0 %vm415_vm0, %v1251_v8  ;;  %v1277_v8 = vld [vmem:[%s1698_s5 + $0x28] sm:$0xff] }
  0x64   : > { %876 = vmatpush.bf16.msra.mxu2 %v1277_v8  ;;  %1387 = vmatpush.bf16.msra.mxu3 %v1277_v8 }
  0x68   : > { %877 = vmatpush.bf16.msra.mxu2 %v1276_v9  ;;  %1388 = vmatpush.bf16.msra.mxu3 %v1276_v9 }
  0x73   : > { %1170 = vmatmul.msk.bf16.gmra.mxu0 %vm415_vm0, %v1252_v13  ;;  %v1275_v13 = vld [vmem:[%s1698_s5 + $0x18] sm:$0xff] }
  0x74   : > { %878 = vmatpush.bf16.msra.mxu2 %v1275_v13  ;;  %1389 = vmatpush.bf16.msra.mxu3 %v1275_v13 }
  0x83   : > { %1171 = vmatmul.msk.bf16.gmra.mxu0 %vm415_vm0, %v1253_v17  ;;  %v1274_v17 = vld [vmem:[%s1698_s5 + $0x10] sm:$0xff] }
  0x84   : > { %879 = vmatpush.bf16.msra.mxu2 %v1274_v17  ;;  %1390 = vmatpush.bf16.msra.mxu3 %v1274_v17 }
  0x90   : > { %v473_v19 = vpop.f32.mrf.mxu0 }
  0x91   : > { %v474_v21 = vadd.f32 %v1520_v20, %v473_v19  ;;  %v1273_v19 = vld [vmem:[%s1698_s5 + $0x8] sm:$0xff] }
  0x92   : > { %880 = vmatpush.bf16.msra.mxu2 %v1273_v19  ;;  %1391 = vmatpush.bf16.msra.mxu3 %v1273_v19 }
  0x93   : > { %1172 = vmatmul.msk.bf16.gmra.mxu0 %vm415_vm0, %v1254_v18  ;;  %v553_v24 = vmax.f32 %v474_v21, 0.0  ;;  %v1272_v21 = vld [vmem:[%s1698_s5] sm:$0xff] }
  0x96   : > { %881 = vmatpush.bf16.msra.mxu2 %v1272_v21  ;;  %1392 = vmatpush.bf16.msra.mxu3 %v1272_v21 }
  0x98   : > { %v475_v22 = vpop.f32.mrf.mxu0 }
  0x99   : > { %v476_v23 = vadd.f32 %v1520_v20, %v475_v22 }
  0x9b   : > { %v554_v25 = vmax.f32 %v476_v23, 0.0 }
  0x9d   : > { %v585_v26 = vpack.c.bf16 %v554_v25, %v553_v24 }
  0x9f   : > { %677 = vmatmul.bf16.vlgmr.msra.gmra.mxu1 %v585_v26 }
  0xa0   : > { %v478_v28 = vpop.f32.mrf.mxu0 }
  0xa1   : > { %v479_v29 = vadd.f32 %v1520_v20, %v478_v28 }
  0xa3   : > { %1173 = vmatmul.msk.bf16.gmra.mxu0 %vm415_vm0, %v1255_v27  ;;  %v555_v32 = vmax.f32 %v479_v29, 0.0 }
  0xa8   : > { %v480_v30 = vpop.f32.mrf.mxu0 }
  0xa9   : > { %v481_v31 = vadd.f32 %v1520_v20, %v480_v30 }
  0xab   : > { %v556_v33 = vmax.f32 %v481_v31, 0.0 }
  0xad   : > { %v586_v34 = vpack.c.bf16 %v556_v33, %v555_v32 }
  0xaf   : > { %682 = vmatmul.bf16.gmra.mxu1 %v586_v34 }
  0xb0   : > { %v483_v36 = vpop.f32.mrf.mxu0 }
  0xb1   : > { %v484_v38 = vadd.f32 %v1520_v20, %v483_v36  ;;  %v1582_v36 = vld [vmem:[%s1697_s4] ss:$0 sm:$0xff] }
  0xb3   : > { %1174 = vmatmul.msk.bf16.gmra.mxu0 %vm415_vm0, %v1256_v35  ;;  %v557_v41 = vmax.f32 %v484_v38, 0.0 }
  0xb8   : > { %v485_v39 = vpop.f32.mrf.mxu0 }
  0xb9   : > { %v486_v40 = vadd.f32 %v1520_v20, %v485_v39 }
  0xbb   : > { %v558_v42 = vmax.f32 %v486_v40, 0.0 }
  0xbd   : > { %v587_v43 = vpack.c.bf16 %v558_v42, %v557_v41 }
  0xbf   : > { %687 = vmatmul.bf16.gmra.mxu1 %v587_v43 }
  0xc0   : > { %v488_v45 = vpop.f32.mrf.mxu0 }
  0xc1   : > { %v489_v47 = vadd.f32 %v1520_v20, %v488_v45 }
  0xc3   : > { %1175 = vmatmul.msk.bf16.gmra.mxu0 %vm415_vm0, %v1257_v44  ;;  %v559_v50 = vmax.f32 %v489_v47, 0.0 }
  0xc8   : > { %v490_v48 = vpop.f32.mrf.mxu0 }
  0xc9   : > { %v491_v49 = vadd.f32 %v1520_v20, %v490_v48 }
  0xcb   : > { %v560_v51 = vmax.f32 %v491_v49, 0.0 }
  0xcd   : > { %v588_v52 = vpack.c.bf16 %v560_v51, %v559_v50 }
  0xcf   : > { %692 = vmatmul.bf16.gmra.mxu1 %v588_v52 }
  0xd0   : > { %v493_v54 = vpop.f32.mrf.mxu0 }
  0xd1   : > { %v494_v56 = vadd.f32 %v1520_v20, %v493_v54 }
  0xd3   : > { %1176 = vmatmul.msk.bf16.gmra.mxu0 %vm415_vm0, %v1258_v53  ;;  %v561_v59 = vmax.f32 %v494_v56, 0.0 }
  0xd8   : > { %v495_v57 = vpop.f32.mrf.mxu0 }
  0xd9   : > { %v496_v58 = vadd.f32 %v1520_v20, %v495_v57 }
  0xdb   : > { %v562_v60 = vmax.f32 %v496_v58, 0.0 }
  0xdd   : > { %v589_v61 = vpack.c.bf16 %v562_v60, %v561_v59 }
  0xdf   : > { %697 = vmatmul.bf16.gmra.mxu1 %v589_v61 }
  0xe0   : > { %v498_v62 = vpop.f32.mrf.mxu0 }
  0xe1   : > { %v499_v63 = vadd.f32 %v1520_v20, %v498_v62 }
  0xe3   : > { %v563_v3 = vmax.f32 %v499_v63, 0.0 }
  0xe8   : > { %v500_v0 = vpop.f32.mrf.mxu0 }
  0xe9   : > { %v501_v1 = vadd.f32 %v1520_v20, %v500_v0 }
  0xeb   : > { %v564_v4 = vmax.f32 %v501_v1, 0.0 }
  0xed   : > { %v590_v5 = vpack.c.bf16 %v564_v4, %v563_v3 }
  0xef   : > { %702 = vmatmul.bf16.gmra.mxu1 %v590_v5 }
  0xf0   : > { %v503_v7 = vpop.f32.mrf.mxu0 }
  0xf1   : > { %v504_v10 = vadd.f32 %v1520_v20, %v503_v7 }
  0xf3   : > { %v565_v14 = vmax.f32 %v504_v10, 0.0 }
  0xf8   : > { %v505_v11 = vpop.f32.mrf.mxu0 }
  0xf9   : > { %v506_v12 = vadd.f32 %v1520_v20, %v505_v11 }
  0xfb   : > { %v566_v15 = vmax.f32 %v506_v12, 0.0 }
  0xfd   : > { %v591_v16 = vpack.c.bf16 %v566_v15, %v565_v14 }
  0xff   : > { %707 = vmatmul.bf16.gmra.mxu1 %v591_v16  ;;  %v538_v16 = vpop.f32.mrf.mxu3 }
 0x100   : > { %v508_v18 = vpop.f32.mrf.mxu0 }
 0x101   : > { %v509_v22 = vadd.f32 %v1520_v20, %v508_v18 }
 0x103   : > { %v567_v25 = vmax.f32 %v509_v22, 0.0 }
 0x108   : > { %v510_v23 = vpop.f32.mrf.mxu0 }
 0x109   : > { %v511_v24 = vadd.f32 %v1520_v20, %v510_v23 }
 0x10b   : > { %v568_v26 = vmax.f32 %v511_v24, 0.0 }
 0x10d   : > { %v592_v27 = vpack.c.bf16 %v568_v26, %v567_v25 }
 0x10f   : > { %712 = vmatmul.bf16.gmra.mxu1 %v592_v27  ;;  %v540_v27 = vpop.f32.mrf.mxu3 }
 0x110   : > { %v513_v28 = vpop.f32.mrf.mxu0 }
 0x111   : > { %v514_v29 = vadd.f32 %v1520_v20, %v513_v28 }
 0x113   : > { %v569_v32 = vmax.f32 %v514_v29, 0.0 }
 0x118   : > { %v515_v30 = vpop.f32.mrf.mxu0 }
 0x119   : > { %v516_v31 = vadd.f32 %v1520_v20, %v515_v30 }
 0x11b   : > { %v570_v33 = vmax.f32 %v516_v31, 0.0 }
 0x11c   : > { %v678_v34 = vpop.f32.mrf.mxu1 }
 0x11d   : > { %v593_v35 = vpack.c.bf16 %v570_v33, %v569_v32  ;;  %v679_v38 = vadd.f32 %v1582_v36, %v678_v34  ;;  %v543_v34 = vpop.f32.mrf.mxu3 }
 0x11f   : > { %717 = vmatmul.bf16.gmra.mxu1 %v593_v35  ;;  %v758_v41 = vmax.f32 %v679_v38, 0.0  ;;  %v539_v35 = vadd.f32 %v1520_v20, %v538_v16 }
 0x120   : > { %v518_v37 = vpop.f32.mrf.mxu0 }
 0x121   : > { %v519_v42 = vadd.f32 %v1520_v20, %v518_v37  ;;  %v541_v37 = vadd.f32 %v1520_v20, %v540_v27 }
 0x123   : > { %v571_v47 = vmax.f32 %v519_v42, 0.0  ;;  %v580_v42 = vmax.f32 %v541_v37, 0.0 }
 0x124   : > { %v680_v39 = vpop.f32.mrf.mxu1 }
 0x125   : > { %v681_v40 = vadd.f32 %v1582_v36, %v680_v39 }
 0x127   : > { %v759_v43 = vmax.f32 %v681_v40, 0.0 }
 0x128   : > { %v520_v44 = vpop.f32.mrf.mxu0 }
 0x129   : > { %v521_v45 = vadd.f32 %v1520_v20, %v520_v44  ;;  %v790_v46 = vpack.c.bf16 %v759_v43, %v758_v41  ;;  %v579_v41 = vmax.f32 %v539_v35, 0.0 }
 0x12b   : > { %v572_v48 = vmax.f32 %v521_v45, 0.0  ;;  %882 = vmatmul.bf16.vlgmr.msra.gmra.mxu2 %v790_v46  ;;  %v598_v45 = vpack.c.bf16 %v580_v42, %v579_v41  ;;  %v545_v46 = vpop.f32.mrf.mxu3 }
 0x12c   : > { %v683_v49 = vpop.f32.mrf.mxu1 }
 0x12d   : > { %v594_v50 = vpack.c.bf16 %v572_v48, %v571_v47  ;;  %v684_v52 = vadd.f32 %v1582_v36, %v683_v49  ;;  %v544_v49 = vadd.f32 %v1520_v20, %v543_v34 }
 0x12f   : > { %722 = vmatmul.bf16.gmra.mxu1 %v594_v50  ;;  %v760_v55 = vmax.f32 %v684_v52, 0.0  ;;  %v546_v50 = vadd.f32 %v1520_v20, %v545_v46 }
 0x130   : > { %v523_v51 = vpop.f32.mrf.mxu0 }
 0x131   : > { %v524_v56 = vadd.f32 %v1520_v20, %v523_v51 }
 0x133   : > { %v573_v61 = vmax.f32 %v524_v56, 0.0  ;;  %v582_v56 = vmax.f32 %v546_v50, 0.0 }
 0x134   : > { %v685_v53 = vpop.f32.mrf.mxu1 }
 0x135   : > { %v686_v54 = vadd.f32 %v1582_v36, %v685_v53 }
 0x137   : > { %v761_v57 = vmax.f32 %v686_v54, 0.0  ;;  %v548_v54 = vpop.f32.mrf.mxu3 }
 0x138   : > { %v525_v58 = vpop.f32.mrf.mxu0 }
 0x139   : > { %v526_v59 = vadd.f32 %v1520_v20, %v525_v58  ;;  %v791_v60 = vpack.c.bf16 %v761_v57, %v760_v55  ;;  %v581_v55 = vmax.f32 %v544_v49, 0.0 }
 0x13b   : > { %v574_v62 = vmax.f32 %v526_v59, 0.0  ;;  %887 = vmatmul.bf16.gmra.mxu2 %v791_v60  ;;  %v599_v59 = vpack.c.bf16 %v582_v56, %v581_v55 }
 0x13c   : > { %v688_v63 = vpop.f32.mrf.mxu1 }
 0x13d   : > { %v595_v0 = vpack.c.bf16 %v574_v62, %v573_v61  ;;  %v689_v2 = vadd.f32 %v1582_v36, %v688_v63  ;;  %v549_v63 = vadd.f32 %v1520_v20, %v548_v54 }
 0x13f   : > { %727 = vmatmul.bf16.gmra.mxu1 %v595_v0  ;;  %v762_v5 = vmax.f32 %v689_v2, 0.0  ;;  %v550_v60 = vpop.f32.mrf.mxu3 }
 0x140   : > { %v528_v1 = vpop.f32.mrf.mxu0  ;;  %v551_v0 = vadd.f32 %v1520_v20, %v550_v60 }
 0x141   : > { %v529_v6 = vadd.f32 %v1520_v20, %v528_v1 }
 0x143   : > { %v575_v11 = vmax.f32 %v529_v6, 0.0 }
 0x144   : > { %v690_v3 = vpop.f32.mrf.mxu1 }
 0x145   : > { %v691_v4 = vadd.f32 %v1582_v36, %v690_v3 }
 0x147   : > { %v763_v7 = vmax.f32 %v691_v4, 0.0  ;;  %v583_v4 = vmax.f32 %v549_v63, 0.0 }
 0x148   : > { %v530_v8 = vpop.f32.mrf.mxu0 }
 0x149   : > { %v531_v9 = vadd.f32 %v1520_v20, %v530_v8  ;;  %v792_v10 = vpack.c.bf16 %v763_v7, %v762_v5  ;;  %v584_v5 = vmax.f32 %v551_v0, 0.0 }
 0x14b   : > { %v576_v12 = vmax.f32 %v531_v9, 0.0  ;;  %892 = vmatmul.bf16.gmra.mxu2 %v792_v10  ;;  %v600_v8 = vpack.c.bf16 %v584_v5, %v583_v4 }
 0x14c   : > { %v693_v13 = vpop.f32.mrf.mxu1 }
 0x14d   : > { %v596_v14 = vpack.c.bf16 %v576_v12, %v575_v11  ;;  %v694_v17 = vadd.f32 %v1582_v36, %v693_v13 }
 0x14f   : > { %732 = vmatmul.bf16.gmra.mxu1 %v596_v14  ;;  %v764_v21 = vmax.f32 %v694_v17, 0.0 }
 0x150   : > { %v533_v15 = vpop.f32.mrf.mxu0 }
 0x151   : > { %v534_v22 = vadd.f32 %v1520_v20, %v533_v15 }
 0x153   : > { %v577_v28 = vmax.f32 %v534_v22, 0.0 }
 0x154   : > { %v695_v18 = vpop.f32.mrf.mxu1 }
 0x155   : > { %v696_v19 = vadd.f32 %v1582_v36, %v695_v18 }
 0x157   : > { %v765_v23 = vmax.f32 %v696_v19, 0.0 }
 0x158   : > { %v535_v24 = vpop.f32.mrf.mxu0 }
 0x159   : > { %v536_v25 = vadd.f32 %v1520_v20, %v535_v24  ;;  %v793_v26 = vpack.c.bf16 %v765_v23, %v764_v21 }
 0x15b   : > { %v578_v29 = vmax.f32 %v536_v25, 0.0  ;;  %897 = vmatmul.bf16.gmra.mxu2 %v793_v26  ;;  %v1620_v25 = vld [vmem:[%s1699_s6] ss:$0 sm:$0xff] }
 0x15c   : > { %v698_v30 = vpop.f32.mrf.mxu1 }
 0x15d   : > { %v597_v31 = vpack.c.bf16 %v578_v29, %v577_v28  ;;  %v699_v32 = vadd.f32 %v1582_v36, %v698_v30 }
 0x15f   : > { %737 = vmatmul.bf16.vlgmr.msrb.gmra.mxu3 %v597_v31  ;;  %v766_v39 = vmax.f32 %v699_v32, 0.0 }
 0x164   : > { %v700_v33 = vpop.f32.mrf.mxu1 }
 0x165   : > { %v701_v38 = vadd.f32 %v1582_v36, %v700_v33 }
 0x167   : > { %v767_v40 = vmax.f32 %v701_v38, 0.0 }
 0x169   : > { %v794_v43 = vpack.c.bf16 %v767_v40, %v766_v39 }
 0x16b   : > { %902 = vmatmul.bf16.gmra.mxu2 %v794_v43 }
 0x16c   : > { %v703_v44 = vpop.f32.mrf.mxu1 }
 0x16d   : > { %v704_v47 = vadd.f32 %v1582_v36, %v703_v44 }
 0x16f   : > { %742 = vmatmul.bf16.gmra.mxu3 %v598_v45  ;;  %v768_v52 = vmax.f32 %v704_v47, 0.0 }
 0x174   : > { %v705_v48 = vpop.f32.mrf.mxu1 }
 0x175   : > { %v706_v51 = vadd.f32 %v1582_v36, %v705_v48 }
 0x177   : > { %v769_v53 = vmax.f32 %v706_v51, 0.0 }
 0x179   : > { %v795_v57 = vpack.c.bf16 %v769_v53, %v768_v52 }
 0x17b   : > { %907 = vmatmul.bf16.gmra.mxu2 %v795_v57 }
 0x17c   : > { %v708_v58 = vpop.f32.mrf.mxu1 }
 0x17d   : > { %v709_v61 = vadd.f32 %v1582_v36, %v708_v58 }
 0x17f   : > { %747 = vmatmul.bf16.gmra.mxu3 %v599_v59  ;;  %v770_v2 = vmax.f32 %v709_v61, 0.0 }
 0x184   : > { %v710_v62 = vpop.f32.mrf.mxu1 }
 0x185   : > { %v711_v1 = vadd.f32 %v1582_v36, %v710_v62 }
 0x187   : > { %v771_v3 = vmax.f32 %v711_v1, 0.0 }
 0x189   : > { %v796_v6 = vpack.c.bf16 %v771_v3, %v770_v2 }
 0x18b   : > { %912 = vmatmul.bf16.gmra.mxu2 %v796_v6 }
 0x18c   : > { %v713_v7 = vpop.f32.mrf.mxu1 }
 0x18d   : > { %v714_v9 = vadd.f32 %v1582_v36, %v713_v7 }
 0x18f   : > { %752 = vmatmul.bf16.gmra.mxu3 %v600_v8  ;;  %v772_v12 = vmax.f32 %v714_v9, 0.0 }
 0x194   : > { %v715_v10 = vpop.f32.mrf.mxu1 }
 0x195   : > { %v716_v11 = vadd.f32 %v1582_v36, %v715_v10 }
 0x197   : > { %v773_v13 = vmax.f32 %v716_v11, 0.0 }
 0x199   : > { %v797_v14 = vpack.c.bf16 %v773_v13, %v772_v12 }
 0x19b   : > { %917 = vmatmul.bf16.gmra.mxu2 %v797_v14 }
 0x19c   : > { %v718_v20 = vpop.f32.mrf.mxu1 }
 0x19d   : > { %v719_v15 = vadd.f32 %v1582_v36, %v718_v20 }
 0x19f   : > { %v774_v18 = vmax.f32 %v719_v15, 0.0 }
 0x1a4   : > { %v720_v16 = vpop.f32.mrf.mxu1 }
 0x1a5   : > { %v721_v17 = vadd.f32 %v1582_v36, %v720_v16 }
 0x1a7   : > { %v775_v19 = vmax.f32 %v721_v17, 0.0 }
 0x1a9   : > { %v798_v21 = vpack.c.bf16 %v775_v19, %v774_v18 }
 0x1ab   : > { %922 = vmatmul.bf16.gmra.mxu2 %v798_v21 }
 0x1ac   : > { %v723_v22 = vpop.f32.mrf.mxu1 }
 0x1ad   : > { %v724_v24 = vadd.f32 %v1582_v36, %v723_v22 }
 0x1ae   : > { %v883_v23 = vpop.f32.mrf.mxu2 }
 0x1af   : > { %v776_v29 = vmax.f32 %v724_v24, 0.0  ;;  %v884_v30 = vadd.f32 %v1620_v25, %v883_v23 }
 0x1b4   : > { %v725_v26 = vpop.f32.mrf.mxu1 }
 0x1b5   : > { %v726_v27 = vadd.f32 %v1582_v36, %v725_v26 }
 0x1b6   : > { %v885_v28 = vpop.f32.mrf.mxu2 }
 0x1b7   : > { %v777_v31 = vmax.f32 %v726_v27, 0.0  ;;  %v886_v32 = vadd.f32 %v1620_v25, %v885_v28 }
 0x1b9   : > { %v1283_v33 = vpack.c.bf16 %v886_v32, %v884_v30  ;;  %v799_v34 = vpack.c.bf16 %v777_v31, %v776_v29 }
 0x1bb   : > { %1284 = vst [vmem:[%s1630_s11] sm:$0xff] %v1283_v33   ;;  %927 = vmatmul.bf16.gmra.mxu2 %v799_v34 }
 0x1bc   : > { %v728_v35 = vpop.f32.mrf.mxu1 }
 0x1bd   : > { %v729_v38 = vadd.f32 %v1582_v36, %v728_v35 }
 0x1be   : > { %v888_v37 = vpop.f32.mrf.mxu2 }
 0x1bf   : > { %v778_v42 = vmax.f32 %v729_v38, 0.0  ;;  %v889_v43 = vadd.f32 %v1620_v25, %v888_v37 }
 0x1c4   : > { %v730_v39 = vpop.f32.mrf.mxu1 }
 0x1c5   : > { %v731_v40 = vadd.f32 %v1582_v36, %v730_v39 }
 0x1c6   : > { %v890_v41 = vpop.f32.mrf.mxu2 }
 0x1c7   : > { %v779_v44 = vmax.f32 %v731_v40, 0.0  ;;  %v891_v45 = vadd.f32 %v1620_v25, %v890_v41 }
 0x1c9   : > { %v1288_v46 = vpack.c.bf16 %v891_v45, %v889_v43  ;;  %v800_v47 = vpack.c.bf16 %v779_v44, %v778_v42 }
 0x1cb   : > { %1360 = vst [vmem:[%s1630_s11 + $0x8] sm:$0xff] %v1288_v46   ;;  %932 = vmatmul.bf16.gmra.mxu2 %v800_v47 }
 0x1cc   : > { %v733_v48 = vpop.f32.mrf.mxu1 }
 0x1cd   : > { %v734_v50 = vadd.f32 %v1582_v36, %v733_v48 }
 0x1ce   : > { %v893_v49 = vpop.f32.mrf.mxu2 }
 0x1cf   : > { %v780_v54 = vmax.f32 %v734_v50, 0.0  ;;  %v894_v55 = vadd.f32 %v1620_v25, %v893_v49 }
 0x1d4   : > { %v735_v51 = vpop.f32.mrf.mxu1 }
 0x1d5   : > { %v736_v52 = vadd.f32 %v1582_v36, %v735_v51 }
 0x1d6   : > { %v895_v53 = vpop.f32.mrf.mxu2 }
 0x1d7   : > { %v781_v56 = vmax.f32 %v736_v52, 0.0  ;;  %v896_v57 = vadd.f32 %v1620_v25, %v895_v53 }
 0x1d9   : > { %v1293_v58 = vpack.c.bf16 %v896_v57, %v894_v55  ;;  %v801_v59 = vpack.c.bf16 %v781_v56, %v780_v54 }
 0x1db   : > { %1361 = vst [vmem:[%s1630_s11 + $0x10] sm:$0xff] %v1293_v58   ;;  %937 = vmatmul.bf16.gmra.mxu2 %v801_v59 }
 0x1de   : > { %v898_v60 = vpop.f32.mrf.mxu2 }
 0x1df   : > { %v899_v63 = vadd.f32 %v1620_v25, %v898_v60 }
 0x1e2   : > { %v738_v61 = vpop.f32.mrf.mxu3 }
 0x1e3   : > { %v739_v1 = vadd.f32 %v1582_v36, %v738_v61 }
 0x1e5   : > { %v782_v5 = vmax.f32 %v739_v1, 0.0 }
 0x1e6   : > { %v900_v62 = vpop.f32.mrf.mxu2 }
 0x1e7   : > { %v901_v0 = vadd.f32 %v1620_v25, %v900_v62 }
 0x1e9   : > { %v1298_v2 = vpack.c.bf16 %v901_v0, %v899_v63 }
 0x1ea   : > { %v740_v3 = vpop.f32.mrf.mxu3 }
 0x1eb   : > { %1362 = vst [vmem:[%s1630_s11 + $0x18] sm:$0xff] %v1298_v2   ;;  %v741_v4 = vadd.f32 %v1582_v36, %v740_v3 }
 0x1ed   : > { %v783_v6 = vmax.f32 %v741_v4, 0.0 }
 0x1ee   : > { %v903_v7 = vpop.f32.mrf.mxu2 }
 0x1ef   : > { %v802_v8 = vpack.c.bf16 %v783_v6, %v782_v5  ;;  %v904_v11 = vadd.f32 %v1620_v25, %v903_v7 }
 0x1f1   : > { %942 = vmatmul.bf16.vlgmr.msra.gmra.mxu3 %v802_v8 }
 0x1f2   : > { %v743_v9 = vpop.f32.mrf.mxu3 }
 0x1f3   : > { %v744_v13 = vadd.f32 %v1582_v36, %v743_v9 }
 0x1f5   : > { %v784_v16 = vmax.f32 %v744_v13, 0.0 }
 0x1f6   : > { %v905_v10 = vpop.f32.mrf.mxu2 }
 0x1f7   : > { %v906_v12 = vadd.f32 %v1620_v25, %v905_v10 }
 0x1f9   : > { %v1303_v14 = vpack.c.bf16 %v906_v12, %v904_v11 }
 0x1fa   : > { %v745_v20 = vpop.f32.mrf.mxu3 }
 0x1fb   : > { %1363 = vst [vmem:[%s1630_s11 + $0x20] sm:$0xff] %v1303_v14   ;;  %v746_v15 = vadd.f32 %v1582_v36, %v745_v20 }
 0x1fd   : > { %v785_v17 = vmax.f32 %v746_v15, 0.0 }
 0x1fe   : > { %v908_v18 = vpop.f32.mrf.mxu2 }
 0x1ff   : > { %v803_v19 = vpack.c.bf16 %v785_v17, %v784_v16  ;;  %v909_v23 = vadd.f32 %v1620_v25, %v908_v18 }
 0x201   : > { %947 = vmatmul.bf16.gmra.mxu3 %v803_v19 }
 0x202   : > { %v748_v21 = vpop.f32.mrf.mxu3 }
 0x203   : > { %v749_v26 = vadd.f32 %v1582_v36, %v748_v21 }
 0x205   : > { %v786_v30 = vmax.f32 %v749_v26, 0.0 }
 0x206   : > { %v910_v22 = vpop.f32.mrf.mxu2 }
 0x207   : > { %v911_v24 = vadd.f32 %v1620_v25, %v910_v22 }
 0x209   : > { %v1308_v27 = vpack.c.bf16 %v911_v24, %v909_v23 }
 0x20a   : > { %v750_v28 = vpop.f32.mrf.mxu3 }
 0x20b   : > { %1364 = vst [vmem:[%s1630_s11 + $0x28] sm:$0xff] %v1308_v27   ;;  %v751_v29 = vadd.f32 %v1582_v36, %v750_v28 }
 0x20d   : > { %v787_v31 = vmax.f32 %v751_v29, 0.0 }
 0x20e   : > { %v913_v32 = vpop.f32.mrf.mxu2 }
 0x20f   : > { %v804_v33 = vpack.c.bf16 %v787_v31, %v786_v30  ;;  %v914_v37 = vadd.f32 %v1620_v25, %v913_v32 }
 0x211   : > { %952 = vmatmul.bf16.gmra.mxu3 %v804_v33 }
 0x212   : > { %v753_v34 = vpop.f32.mrf.mxu3 }
 0x213   : > { %v754_v39 = vadd.f32 %v1582_v36, %v753_v34 }
 0x215   : > { %v788_v43 = vmax.f32 %v754_v39, 0.0 }
 0x216   : > { %v915_v35 = vpop.f32.mrf.mxu2 }
 0x217   : > { %v916_v38 = vadd.f32 %v1620_v25, %v915_v35 }
 0x219   : > { %v1313_v40 = vpack.c.bf16 %v916_v38, %v914_v37 }
 0x21a   : > { %v755_v41 = vpop.f32.mrf.mxu3 }
 0x21b   : > { %1365 = vst [vmem:[%s1630_s11 + $0x30] sm:$0xff] %v1313_v40   ;;  %v756_v42 = vadd.f32 %v1582_v36, %v755_v41 }
 0x21d   : > { %v789_v44 = vmax.f32 %v756_v42, 0.0 }
 0x21e   : > { %v918_v45 = vpop.f32.mrf.mxu2 }
 0x21f   : > { %v805_v46 = vpack.c.bf16 %v789_v44, %v788_v43  ;;  %v919_v48 = vadd.f32 %v1620_v25, %v918_v45 }
 0x221   : > { %957 = vmatmul.bf16.gmra.mxu3 %v805_v46 }
 0x226   : > { %v920_v47 = vpop.f32.mrf.mxu2 }
 0x227   : > { %v921_v49 = vadd.f32 %v1620_v25, %v920_v47 }
 0x229   : > { %v1318_v50 = vpack.c.bf16 %v921_v49, %v919_v48 }
 0x22b   : > { %1366 = vst [vmem:[%s1630_s11 + $0x38] sm:$0xff] %v1318_v50  }
 0x22e   : > { %v923_v51 = vpop.f32.mrf.mxu2 }
 0x22f   : > { %v924_v53 = vadd.f32 %v1620_v25, %v923_v51 }
 0x236   : > { %v925_v52 = vpop.f32.mrf.mxu2 }
 0x237   : > { %v926_v36 = vadd.f32 %v1620_v25, %v925_v52 }
 0x239   : > { %v1323_v54 = vpack.c.bf16 %v926_v36, %v924_v53 }
 0x23b   : > { %1367 = vst [vmem:[%s1630_s11 + $0x40] sm:$0xff] %v1323_v54  }
 0x23e   : > { %v928_v55 = vpop.f32.mrf.mxu2 }
 0x23f   : > { %v929_v57 = vadd.f32 %v1620_v25, %v928_v55 }
 0x246   : > { %v930_v56 = vpop.f32.mrf.mxu2 }
 0x247   : > { %v931_v58 = vadd.f32 %v1620_v25, %v930_v56 }
 0x249   : > { %v1328_v59 = vpack.c.bf16 %v931_v58, %v929_v57 }
 0x24b   : > { %1368 = vst [vmem:[%s1630_s11 + $0x48] sm:$0xff] %v1328_v59  }
 0x24e   : > { %v933_v60 = vpop.f32.mrf.mxu2 }
 0x24f   : > { %v934_v62 = vadd.f32 %v1620_v25, %v933_v60 }
 0x256   : > { %v935_v61 = vpop.f32.mrf.mxu2 }
 0x257   : > { %v936_v63 = vadd.f32 %v1620_v25, %v935_v61 }
 0x259   : > { %v1333_v0 = vpack.c.bf16 %v936_v63, %v934_v62 }
 0x25b   : > { %1369 = vst [vmem:[%s1630_s11 + $0x50] sm:$0xff] %v1333_v0  }
 0x25e   : > { %v938_v1 = vpop.f32.mrf.mxu2 }
 0x25f   : > { %v939_v3 = vadd.f32 %v1620_v25, %v938_v1 }
 0x266   : > { %v940_v2 = vpop.f32.mrf.mxu2 }
 0x267   : > { %v941_v4 = vadd.f32 %v1620_v25, %v940_v2 }
 0x269   : > { %v1338_v5 = vpack.c.bf16 %v941_v4, %v939_v3 }
 0x26b   : > { %1370 = vst [vmem:[%s1630_s11 + $0x58] sm:$0xff] %v1338_v5  }
 0x274   : > { %v943_v6 = vpop.f32.mrf.mxu3 }
 0x275   : > { %v944_v8 = vadd.f32 %v1620_v25, %v943_v6 }
 0x27c   : > { %v945_v7 = vpop.f32.mrf.mxu3 }
 0x27d   : > { %v946_v9 = vadd.f32 %v1620_v25, %v945_v7 }
 0x27f   : > { %v1343_v10 = vpack.c.bf16 %v946_v9, %v944_v8 }
 0x281   : > { %1371 = vst [vmem:[%s1630_s11 + $0x60] sm:$0xff] %v1343_v10  }
 0x284   : > { %v948_v11 = vpop.f32.mrf.mxu3 }
 0x285   : > { %v949_v13 = vadd.f32 %v1620_v25, %v948_v11 }
 0x28c   : > { %v950_v12 = vpop.f32.mrf.mxu3 }
 0x28d   : > { %v951_v14 = vadd.f32 %v1620_v25, %v950_v12 }
 0x28f   : > { %v1348_v20 = vpack.c.bf16 %v951_v14, %v949_v13 }
 0x291   : > { %1372 = vst [vmem:[%s1630_s11 + $0x68] sm:$0xff] %v1348_v20  }
 0x294   : > { %v953_v15 = vpop.f32.mrf.mxu3 }
 0x295   : > { %v954_v17 = vadd.f32 %v1620_v25, %v953_v15 }
 0x29c   : > { %v955_v16 = vpop.f32.mrf.mxu3 }
 0x29d   : > { %v956_v18 = vadd.f32 %v1620_v25, %v955_v16 }
 0x29f   : > { %v1353_v19 = vpack.c.bf16 %v956_v18, %v954_v17 }
 0x2a1   : > { %1373 = vst [vmem:[%s1630_s11 + $0x70] sm:$0xff] %v1353_v19  }
 0x2a4   : > { %v958_v21 = vpop.f32.mrf.mxu3 }
 0x2a5   : > { %v959_v23 = vadd.f32 %v1620_v25, %v958_v21 }
 0x2ac   : > { %v960_v22 = vpop.f32.mrf.mxu3 }
 0x2ad   : > { %v961_v24 = vadd.f32 %v1620_v25, %v960_v22 }
 0x2af   : > { %v1358_v26 = vpack.c.bf16 %v961_v24, %v959_v23 }
 0x2b1   : > { %1374 = vst [vmem:[%s1630_s11 + $0x78] sm:$0xff] %v1358_v26  }
 0x2b2 PF: > { %s17_s24 = sadd.s32 1, %s1410_s24  }
 0x2b3   : > { %p14_p4 = scmp.ge.s32.totalorder %s17_s24, 4  }
 0x2b5   :  { %16 = sbr.rel (!%p14_p4) target bundleno = 1 (0x1), region = 78 }

</bundles_post_ra>
